<compile_context>
chip_gen: v6e
topology: v6e:2x2x1
jax: 0.10.0
libtpu: 0.0.40
codegen_flags: <defaults>
</compile_context>

<pallas_src>
import jax
import jax.numpy as jnp
from jax import lax
from jax.experimental import pallas as pl
from jax.experimental.pallas import tpu as pltpu


def _energy_softmax_kernel(de_ref, en_ref, attn_ref, acc_ref):
    """Grid = (batch, hw_tiles).  Accumulate energy over spatial tiles and
    emit the softmax channel-attention map at the last tile.

    de_ref:   (1, c_de, T)     decoder tile
    en_ref:   (1, c_en, T)     encoder tile
    attn_ref: (1, c_de, c_en)  output attention map (f32)
    acc_ref:  (c_de, c_en)     f32 VMEM accumulator scratch
    """
    j = pl.program_id(1)

    @pl.when(j == 0)
    def _():
        acc_ref[...] = jnp.zeros_like(acc_ref)

    de = de_ref[0]                       # (c_de, T)
    en = en_ref[0]                       # (c_en, T)
    # energy tile = de @ en^T  (contract over the spatial axis, f32 accumulate)
    acc_ref[...] += lax.dot_general(
        de, en,
        dimension_numbers=(((1,), (1,)), ((), ())),
        preferred_element_type=jnp.float32)

    @pl.when(j == pl.num_programs(1) - 1)
    def _():
        e = acc_ref[...]                                   # (c_de, c_en)
        e_new = jnp.max(e, axis=-1, keepdims=True) - e     # max - energy
        m = jnp.max(e_new, axis=-1, keepdims=True)         # stable softmax
        p = jnp.exp(e_new - m)
        attn_ref[0] = p / jnp.sum(p, axis=-1, keepdims=True)


def _apply_attention_gate_kernel(attn_ref, en_ref, gate_ref, o_ref):
    """Grid = (batch, hw_tiles).  out_tile = (attn @ en_tile) * sigmoid(gate).

    attn_ref: (1, c_de, c_en)  attention map (f32)
    en_ref:   (1, c_en, T)     encoder tile
    gate_ref: (1, c_de, T)     gate-map tile
    o_ref:    (1, c_de, T)     output tile (lane-dense in T)
    """
    en = en_ref[0]                                     # (c_en, T)
    attn = attn_ref[0].astype(en.dtype)                # (c_de, c_en)
    y = jnp.dot(attn, en, preferred_element_type=jnp.float32)   # (c_de, T) f32
    g = gate_ref[0].astype(jnp.float32)
    g = 1.0 / (1.0 + jnp.exp(-g))                      # sigmoid (EUP exp)
    o_ref[0] = (y * g).astype(o_ref.dtype)


def _pick_hw_tile(hw, cap=2048):
    """Spatial tile: full extent if small enough, else the largest 128-multiple
    divisor of hw that is <= cap (satisfies the TPU lane constraint)."""
    if hw <= cap:
        return hw
    t = (cap // 128) * 128
    while t >= 128:
        if hw % t == 0:
            return t
        t -= 128
    return hw  # fall back: no spatial tiling


def lrm(input_en, input_de, gate_map, *, hw_tile=None):
    """Matches LRM.forward. input_en: (b, c_en, h, w); input_de: (b, c_de, h, w);
    gate_map broadcastable to (b, c_de, h, w). Returns (b, c_de, h, w)."""
    b, c_en, h, w = input_en.shape
    b2, c_de, h2, w2 = input_de.shape
    assert (b, h, w) == (b2, h2, w2)
    hw = h * w

    # Flatten spatial dims (glue, plain JAX).
    en = input_en.reshape(b, c_en, hw)
    de = input_de.reshape(b, c_de, hw)
    gate = jnp.broadcast_to(gate_map, (b, c_de, h, w)).reshape(b, c_de, hw)

    T = hw_tile if hw_tile is not None else _pick_hw_tile(hw)
    assert hw % T == 0
    n_t = hw // T

    vmem_limit = 48 * 1024 * 1024  # fits v7x's 64 MiB physical VMEM

    # ---- Kernel A: energy accumulation (reduction over hw tiles) + softmax.
    attn = pl.pallas_call(
        _energy_softmax_kernel,
        out_shape=jax.ShapeDtypeStruct((b, c_de, c_en), jnp.float32),
        grid_spec=pltpu.PrefetchScalarGridSpec(
            num_scalar_prefetch=0,
            grid=(b, n_t),
            in_specs=[
                pl.BlockSpec((1, c_de, T), lambda bi, j: (bi, 0, j)),
                pl.BlockSpec((1, c_en, T), lambda bi, j: (bi, 0, j)),
            ],
            out_specs=pl.BlockSpec((1, c_de, c_en), lambda bi, j: (bi, 0, 0)),
            scratch_shapes=[pltpu.VMEM((c_de, c_en), jnp.float32)],
        ),
        compiler_params=pltpu.CompilerParams(
            dimension_semantics=("parallel", "arbitrary"),
            vmem_limit_bytes=vmem_limit),
    )(de, en)

    # ---- Kernel B: apply attention map + fused sigmoid gating per tile.
    out_flat = pl.pallas_call(
        _apply_attention_gate_kernel,
        out_shape=jax.ShapeDtypeStruct((b, c_de, hw), input_en.dtype),
        grid_spec=pltpu.PrefetchScalarGridSpec(
            num_scalar_prefetch=0,
            grid=(b, n_t),
            in_specs=[
                pl.BlockSpec((1, c_de, c_en), lambda bi, j: (bi, 0, 0)),
                pl.BlockSpec((1, c_en, T), lambda bi, j: (bi, 0, j)),
                pl.BlockSpec((1, c_de, T), lambda bi, j: (bi, 0, j)),
            ],
            out_specs=pl.BlockSpec((1, c_de, T), lambda bi, j: (bi, 0, j)),
        ),
        compiler_params=pltpu.CompilerParams(
            dimension_semantics=("parallel", "parallel"),
            vmem_limit_bytes=vmem_limit),
    )(attn, en, gate)

    return out_flat.reshape(b, c_de, h, w)


def _reference(input_en, input_de, gate_map):
    """Pure-JAX mirror of LRM.forward."""
    b, c_en, h, w = input_en.shape
    _, c_de, _, _ = input_de.shape
    en = input_en.reshape(b, c_en, h * w)
    de = input_de.reshape(b, c_de, h * w)
    energy = jnp.einsum("bdk,bek->bde", de, en)
    energy_new = jnp.max(energy, axis=-1, keepdims=True) - energy
    attn = jax.nn.softmax(energy_new, axis=-1)
    out = jnp.einsum("bde,bek->bdk", attn, en).reshape(b, c_de, h, w)
    return out * jax.nn.sigmoid(jnp.broadcast_to(gate_map, out.shape))


if __name__ == "__main__":
    key = jax.random.PRNGKey(0)
    k_en, k_de, k_g = jax.random.split(key, 3)

    B, C_EN, C_DE, H, W = 2, 4, 8, 16, 16
    input_en = 0.5 * jax.random.normal(k_en, (B, C_EN, H, W), dtype=jnp.float32)
    input_de = 0.5 * jax.random.normal(k_de, (B, C_DE, H, W), dtype=jnp.float32)
    gate_map = jax.random.normal(k_g, (B, C_DE, H, W), dtype=jnp.float32)

    out = lrm(input_en, input_de, gate_map)
    out = jax.block_until_ready(out)

    ref = _reference(input_en, input_de, gate_map)
    assert out.shape == ref.shape == (B, C_DE, H, W)
    assert jnp.allclose(out, ref, atol=1e-3, rtol=1e-3), "mismatch vs reference LRM"

    print("KERNEL_OK")
</pallas_src>

<mosaic_0001>
module attributes {stable_mosaic.version = 11 : i64} {
  func.func @_energy_softmax_kernel(%arg0: i32, %arg1: i32, %arg2: memref<1x8x256xf32, #tpu.memory_space<vmem>>, %arg3: memref<1x4x256xf32, #tpu.memory_space<vmem>>, %arg4: memref<1x8x4xf32, #tpu.memory_space<vmem>>, %arg5: memref<8x4xf32, #tpu.memory_space<vmem>>) attributes {dimension_semantics = [#tpu.dimension_semantics<parallel>, #tpu.dimension_semantics<arbitrary>], iteration_bounds = array<i64: 2, 1>, scalar_prefetch = 0 : i64, scratch_operands = 1 : i64, tpu.core_type = #tpu.core_type<tc>, window_params = [{transform_indices = @transform_0, window_bounds = array<i64: 1, 8, 256>}, {transform_indices = @transform_1, window_bounds = array<i64: 1, 4, 256>}, {transform_indices = @transform_2, window_bounds = array<i64: 1, 8, 4>}]} {
    %c0_i32 = arith.constant 0 : i32
    %0 = arith.cmpi eq, %arg1, %c0_i32 : i32
    %1 = arith.extui %0 : i1 to i32
    %c0_i32_0 = arith.constant 0 : i32
    %2 = arith.cmpi ne, %1, %c0_i32_0 : i32
    scf.if %2 {
      %cst_12 = arith.constant 0.000000e+00 : f32
      %14 = vector.broadcast %cst_12 : f32 to vector<8x4xf32>
      %c0_13 = arith.constant 0 : index
      %c0_14 = arith.constant 0 : index
      %15 = vector.load %arg5[%c0_13, %c0_14] : memref<8x4xf32, #tpu.memory_space<vmem>>, vector<8x4xf32>
      tpu.vector_store %arg5[%c0_13, %c0_14], %14 {strides = array<i32>} : memref<8x4xf32, #tpu.memory_space<vmem>>, vector<8x4xf32>,
    } else {
    }
    %c0 = arith.constant 0 : index
    %c0_1 = arith.constant 0 : index
    %c0_2 = arith.constant 0 : index
    %3 = vector.load %arg2[%c0, %c0_1, %c0_2] : memref<1x8x256xf32, #tpu.memory_space<vmem>>, vector<1x8x256xf32>
    %4 = vector.shape_cast %3 : vector<1x8x256xf32> to vector<8x256xf32>
    %c0_3 = arith.constant 0 : index
    %c0_4 = arith.constant 0 : index
    %c0_5 = arith.constant 0 : index
    %5 = vector.load %arg3[%c0_3, %c0_4, %c0_5] : memref<1x4x256xf32, #tpu.memory_space<vmem>>, vector<1x4x256xf32>
    %6 = vector.shape_cast %5 : vector<1x4x256xf32> to vector<4x256xf32>
    %c0_6 = arith.constant 0 : index
    %c0_7 = arith.constant 0 : index
    %7 = vector.load %arg5[%c0_6, %c0_7] : memref<8x4xf32, #tpu.memory_space<vmem>>, vector<8x4xf32>
    %cst = arith.constant dense<0.000000e+00> : vector<8x4xf32>
    %8 = tpu.matmul %4, %6, %cst {dimension_numbers = #tpu.dot_dimension_numbers<[1], [1], [0], [0], [0, 0, 1, 0], [], []>} : vector<8x256xf32>, vector<4x256xf32>, vector<8x4xf32> -> vector<8x4xf32>
    %9 = arith.addf %7, %8 : vector<8x4xf32>
    %c0_8 = arith.constant 0 : index
    %c0_9 = arith.constant 0 : index
    %10 = vector.load %arg5[%c0_8, %c0_9] : memref<8x4xf32, #tpu.memory_space<vmem>>, vector<8x4xf32>
    tpu.vector_store %arg5[%c0_8, %c0_9], %9 {strides = array<i32>} : memref<8x4xf32, #tpu.memory_space<vmem>>, vector<8x4xf32>,
    %c0_i32_10 = arith.constant 0 : i32
    %11 = arith.cmpi eq, %arg1, %c0_i32_10 : i32
    %12 = arith.extui %11 : i1 to i32
    %c0_i32_11 = arith.constant 0 : i32
    %13 = arith.cmpi ne, %12, %c0_i32_11 : i32
    scf.if %13 {
      %c0_12 = arith.constant 0 : index
      %c0_13 = arith.constant 0 : index
      %14 = vector.load %arg5[%c0_12, %c0_13] : memref<8x4xf32, #tpu.memory_space<vmem>>, vector<8x4xf32>
      %cst_14 = arith.constant dense<0xFF800000> : vector<8xf32>
      %15 = vector.multi_reduction <maximumf>, %14, %cst_14 [1] : vector<8x4xf32> to vector<8xf32>
      %16 = vector.shape_cast %15 : vector<8xf32> to vector<8x1xf32>
      %17 = vector.broadcast %16 : vector<8x1xf32> to vector<8x4xf32>
      %18 = arith.subf %17, %14 : vector<8x4xf32>
      %cst_15 = arith.constant dense<0xFF800000> : vector<8xf32>
      %19 = vector.multi_reduction <maximumf>, %18, %cst_15 [1] : vector<8x4xf32> to vector<8xf32>
      %20 = vector.shape_cast %19 : vector<8xf32> to vector<8x1xf32>
      %21 = vector.broadcast %20 : vector<8x1xf32> to vector<8x4xf32>
      %22 = arith.subf %18, %21 : vector<8x4xf32>
      %23 = math.exp %22 : vector<8x4xf32>
      %cst_16 = arith.constant dense<0.000000e+00> : vector<8xf32>
      %24 = vector.multi_reduction <add>, %23, %cst_16 [1] : vector<8x4xf32> to vector<8xf32>
      %25 = vector.shape_cast %24 : vector<8xf32> to vector<8x1xf32>
      %26 = vector.broadcast %25 : vector<8x1xf32> to vector<8x4xf32>
      %27 = arith.divf %23, %26 : vector<8x4xf32>
      %c0_17 = arith.constant 0 : index
      %c0_18 = arith.constant 0 : index
      %c0_19 = arith.constant 0 : index
      %28 = vector.load %arg4[%c0_17, %c0_18, %c0_19] : memref<1x8x4xf32, #tpu.memory_space<vmem>>, vector<1x8x4xf32>
      %29 = vector.shape_cast %28 : vector<1x8x4xf32> to vector<8x4xf32>
      %30 = vector.shape_cast %27 : vector<8x4xf32> to vector<1x8x4xf32>
      tpu.vector_store %arg4[%c0_17, %c0_18, %c0_19], %30 {strides = array<i32>} : memref<1x8x4xf32, #tpu.memory_space<vmem>>, vector<1x8x4xf32>,
    } else {
    }
    return
  }
  func.func @transform_0(%arg0: i32, %arg1: i32) -> (i32, i32, i32) {
    %c0_i32 = arith.constant 0 : i32
    %c0_i32_0 = arith.constant 0 : i32
    return %arg0, %c0_i32, %arg1 : i32, i32, i32
  }
  func.func @transform_1(%arg0: i32, %arg1: i32) -> (i32, i32, i32) {
    %c0_i32 = arith.constant 0 : i32
    %c0_i32_0 = arith.constant 0 : i32
    return %arg0, %c0_i32, %arg1 : i32, i32, i32
  }
  func.func @transform_2(%arg0: i32, %arg1: i32) -> (i32, i32, i32) {
    %c0_i32 = arith.constant 0 : i32
    %c0_i32_0 = arith.constant 0 : i32
    %c0_i32_1 = arith.constant 0 : i32
    return %arg0, %c0_i32, %c0_i32_0 : i32, i32, i32
  }
}

</mosaic_0001>

<bundles_post_ra>
// kernel: tpu_custom_call.1
= control target key start
LH: loop header
LB: loop body
LE: loop exit
PB: predicated region body
PF: predicated region fallthrough
CT: control target
= control target key end

     0   :  { %7 = vsyncpa [#allocation4], 0  ;;  %s776_s0 = inlined_call_operand.hbm [shape: f32[2,8,256], index: 0, kind: input, shape index: {}]   ;;  %s777_s1 = inlined_call_operand.hbm [shape: f32[2,4,256], index: 1, kind: input, shape index: {}]   ;;  %s778_s2 = inlined_call_operand.vmem [shape: f32[2,8,4], index: 2, kind: output, shape index: {}]  }
   0x1   :  { %9 = vsyncpa [#allocation4 + $0x1], 0 }
   0x2   :  { %10 = vsyncpa [#allocation6], 0 }
   0x3   :  { %12 = vsyncpa [#allocation6 + $0x1], 0  ;;  %s642_s9 = smov 0   ;;  %s644_s10 = smov 0  }
   0x4   :  { %s646_s11 = smov 0   ;;  %s648_s12 = smov 0  }
   0x5   :  { %s650_s13 = smov 0   ;;  %s652_s14 = smov 0  }
   0x6 LB: > { %s428_s15 = sadd.s32 4294967295, %s622_s14   ;;  %s30_s16 = sadd.s32 1, %s618_s13  ;;  %s622_s14 = sphi %s652_s14, %s18_s14   ;;  %s618_s13 = sphi %s650_s13, %s787_s13   ;;  %s614_s12 = sphi %s648_s12, %s786_s12   ;;  %s610_s11 = sphi %s646_s11, %s785_s11   ;;  %s606_s10 = sphi %s644_s10, %s784_s10   ;;  %s602_s9 = sphi %s642_s9, %s783_s9  }
   0x7   : > { %p32_p0 = scmp.ge.s32.totalorder %s30_s16, 2  ;;  %s39_s17 = sadd.s32 1, %s610_s11 }
   0x8   : > { %p46_p1 = scmp.ne.s32.totalorder %s610_s11, %s606_s10  ;;  %p47_p2 = scmp.eq.s32.totalorder %s622_s14, 0 }
   0x9   : > { %s789_s16 = smov (%p32_p0, %s30_s16), 0  ;;  %p52_p4 = scmp.ne.s32.totalorder %s606_s10, %s602_s9 }
   0xa   : > { %p678_p3 = por %p47_p2, %p46_p1  ;;  %s34_s19 = ssub.s32 %s618_s13, %s789_s16 }
   0xb   : > { %p53_p5 = scmp.eq.s32.totalorder %s428_s15, 0  ;;  %p37_p6 = scmp.eq.s32.totalorder %s34_s19, 0 }
   0xc   : > { %p457_p8 = scmp.lt.s32.totalorder %s622_s14, 2  ;;  %s694_s22 = sand.u32 1, %s610_s11  }
   0xd   : > { %p685_p7 = por %p53_p5, %p52_p4  ;;  %s444_s23 = sshll.u32 %s618_s13, 8 }
   0xe   : > { %s691_s21 = scalar_select %p37_p6, %s610_s11, %s39_s17  }
   0xf   : > { %s432_s24 = sshll.u32 %s694_s22, 4  ;;  %s142_s27 = scalar_lea.hbm %s776_s0, %s444_s23 }
  0x10   : > { %s134_s28 = scalar_lea.vmem [#allocation3], %s432_s24  ;;  %p703_p9 = pnand %p457_p8, %p678_p3 }
  0x11   : > { %s144_s29 = sshll.u32 %s134_s28, 4  ;;  %p438_p10 = scmp.ge.s32.totalorder %s622_s14, 1  ;;  %s145_s29 = int_to_ptr.vmem [resolvable:$true] %s144_s29 }
  0x12   : > { %p170_p11 = scmp.lt.s32.totalorder %s622_s14, 3  ;;  %s131_s3 = scalar_lea.sflag [#allocation4], %s694_s22 }
  0x13   : > { %p514_p12 = pneg %p703_p9  ;;  %s525_s4 = scalar_lea.vmem %s145_s29, 256 }
  0x14   : > { %p526_p13 = scmp.ne.s32.totalorder %s145_s29, %s525_s4  ;;  %s624_s5 = smov [#allocation3]  }
  0x15   : > { %s530_s6 = sshll.u32 %s624_s5, 4  ;;  %s531_s6 = int_to_ptr.vmem [resolvable:$false] %s530_s6 }
  0x16   : > { %p528_p0 = pnand %p526_p13, %p514_p12  ;;  %s532_s7 = scalar_lea.vmem %s531_s6, 512 }
  0x17   : > { %p533_p2 = scmp.lt.s32.totalorder %s145_s29, %s531_s6  ;;  %p534_p3 = scmp.lt.s32.totalorder %s532_s7, %s525_s4 }
  0x18   : > { %p529_p1 = pneg %p528_p0 }
  0x19   : > { %p535_p4 = por %p534_p3, %p533_p2 }
  0x1b   : > { %p536_p5 = pnand %p535_p4, %p529_p1 }
  0x1d   : > { %539 = shalt.err (!%p536_p5)
}
  0x1e   : > { %453 = dma.hbm_to_vmem [thread:$0]  (!%p703_p9), %s142_s27, 256, %s145_s29, %s131_s3  }
  0x1f   : > { %p721_p6 = pnand %p438_p10, %p170_p11  ;;  %s435_s9 = sshll.u32 %s694_s22, 3 }
  0x20   : > { %s445_s15 = sshll.u32 %s618_s13, 7  ;;  %s155_s23 = scalar_lea.vmem [#allocation5], %s435_s9 }
  0x21   : > { %s163_s19 = scalar_lea.hbm %s777_s1, %s445_s15  ;;  %s165_s24 = sshll.u32 %s155_s23, 4  ;;  %s166_s24 = int_to_ptr.vmem [resolvable:$true] %s165_s24 }
  0x22   : > { %s152_s25 = scalar_lea.sflag [#allocation6], %s694_s22  ;;  %s553_s26 = scalar_lea.vmem %s166_s24, 128 }
  0x23   : > { %p554_p8 = scmp.ne.s32.totalorder %s166_s24, %s553_s26  ;;  %s625_s27 = smov [#allocation5]  }
  0x24   : > { %s558_s28 = sshll.u32 %s625_s27, 4  ;;  %s559_s28 = int_to_ptr.vmem [resolvable:$false] %s558_s28 }
  0x25   : > { %p556_p13 = pnand %p554_p8, %p514_p12  ;;  %s560_s29 = scalar_lea.vmem %s559_s28, 256 }
  0x26   : > { %p561_p10 = scmp.lt.s32.totalorder %s166_s24, %s559_s28  ;;  %p562_p11 = scmp.lt.s32.totalorder %s560_s29, %s553_s26 }
  0x27   : > { %p557_p0 = pneg %p556_p13 }
  0x28   : > { %p563_p1 = por %p562_p11, %p561_p10 }
  0x2a   : > { %p564_p2 = pnand %p563_p1, %p557_p0 }
  0x2c   : > { %567 = shalt.err (!%p564_p2)
}
  0x2d   : > { %456 = dma.hbm_to_vmem [thread:$0]  (!%p703_p9), %s163_s19, 128, %s166_s24, %s152_s25  }
  0x2e   : > { %174 = sbr.rel (%p721_p6) target bundleno = 719 (0x2cf), region = 28  ;;  %s176_s22 = sand.u32 (!%p721_p6), 1, %s606_s10  }
  0x2f   : > { %s439_s3 = sshll.u32 (!%p721_p6), %s176_s22, 4  ;;  %s177_s4 = scalar_lea.sflag (!%p721_p6), [#allocation4], %s176_s22 }
  0x30   : > { %s180_s5 = scalar_lea.vmem (!%p721_p6), [#allocation3], %s439_s3 }
  0x33   : > { %593 = dma.done.wait (%p685_p7), %s177_s4, 256  }
  0x34   : > { %595 = vsyncadd (%p685_p7), %s177_s4, 4294967040  ;;  %s440_s6 = sshll.u32 %s176_s22, 3  ;;  %s186_s7 = scalar_lea.sflag [#allocation6], %s176_s22 }
  0x35   : > { %s189_s9 = scalar_lea.vmem [#allocation5], %s440_s6 }
  0x36   : > { %597 = dma.done.wait (%p685_p7), %s186_s7, 128  }
  0x37   : > { %599 = vsyncadd (%p685_p7), %s186_s7, 4294967168  ;;  %vm224_vm0 = vcmask 31744   ;;  %v626_v0 = vmov 0.0   ;;  %v228_v1 = vld [vmem:[%s189_s9] sm:$0xff]  ;;  %v227_v2 = vld [vmem:[%s180_s5 + $0x8] sm:$0xff]  ;;  %p216_p7 = scmp.lt.s32.totalorder %s614_s12, 1 }
  0x38   : > { %225 = vst.msk [vmem:[#allocation2] sm:$0xff] %vm224_vm0, %v626_v0  ;;  %v231_v3 = vcombine.high %v228_v1, %v228_v1  ;;  %297 = vmatprep.mubr.f32.mxu0 %v227_v2  ;;  %v226_v4 = vld [vmem:[%s180_s5] sm:$0xff] }
  0x39   : > { %s791_s12 = smov (!%p216_p7, %s614_s12), 1 }
  0x3a   : > { %263 = vmatprep.subr.mxu0 %v231_v3  ;;  %s441_s20 = sshll.u32 %s791_s12, 3 }
  0x3b   : > { %264 = vmatpush1.xpose.msra.mxu0 %v228_v1  ;;  %s219_s15 = scalar_lea.vmem %s778_s2, %s441_s20 }
  0x3e   : > { %298 = vmatmul.mubr.f32.vlgmr.msra.gmra.mxu0 %v226_v4 }
  0x3f   : > { %v229_v5 = vld [vmem:[#allocation2] sm:$0xff] }
  0xfe   : > { %v299_v6 = vpop.f32.mrf.mxu0 }
  0xff   : > { %v303_v7 = vadd.f32 %v299_v6, %v229_v5 }
 0x100   : > { %v301_v8 = vpop.f32.mrf.mxu0 }
 0x101   : > { %305 = vst.msk [vmem:[#allocation2] sm:$0xff] %vm224_vm0, %v303_v7 }
 0x108   : > { %v309_v9 = vld [vmem:[#allocation2] sm:$0xff] }
 0x109   : > { %v310_v10 = vsel %vm224_vm0, %v309_v9, -inf }
 0x10a   : > { %311 = vmax.xlane.f32.xlu0 %v310_v10 }
 0x193   : > { %v312_v11 = vpop.xlane.xlu0 %311 }
 0x194   : > { %v313_v12 = vsub.f32 %v312_v11, %v309_v9 }
 0x196   : > { %v314_v13 = vsel %vm224_vm0, %v313_v12, -inf }
 0x197   : > { %315 = vmax.xlane.f32.xlu0 %v314_v13 }
 0x220   : > { %v316_v14 = vpop.xlane.xlu0 %315 }
 0x221   : > { %v317_v15 = vsub.f32 %v313_v12, %v316_v14 }
 0x223   : > { %v318_v16 = vmul.f32 1.442695, %v317_v15 }
 0x225   : > { %508 = vpow2.f32 %v318_v16 }
 0x232   : > { %v509_v17 = vpop.eup %508 }
 0x233   : > { %v320_v18 = vsel %vm224_vm0, %v509_v17, 0.0 }
 0x234   : > { %321 = vadd.xlane.f32.xlu1 %v320_v18 }
 0x2bd   : > { %v322_v19 = vpop.xlane.xlu1 %321 }
 0x2be   : > { %510 = vrcp.f32 %v322_v19 }
 0x2cb   : > { %v511_v20 = vpop.eup %510 }
 0x2cc   : > { %v324_v21 = vmul.f32 %v511_v20, %v509_v17 }
 0x2ce   : > { %325 = vst.msk [vmem:[%s219_s15] sm:$0xff] %vm224_vm0, %v324_v21 }
 0x2cf PF: > { %s18_s14 = sadd.s32 1, %s622_s14   ;;  %s783_s9 = smov %s606_s10 }
 0x2d0   : > { %p15_p9 = scmp.ge.s32.totalorder %s18_s14, 4   ;;  %s784_s10 = smov %s610_s11 }
 0x2d1   : > { %s785_s11 = smov %s691_s21  ;;  %s786_s12 = smov %s618_s13 }
 0x2d2   : > { %s787_s13 = smov %s789_s16  ;;  %17 = sbr.rel (!%p15_p9) target bundleno = 6 (0x6), region = 89 }
 0x2d7   :  { %345 = vsyncpa [#allocation4], 1 }
 0x2d8   :  { %347 = vsyncpa [#allocation4 + $0x1], 1 }
 0x2d9   :  { %348 = vsyncpa [#allocation6], 1 }
 0x2da   :  { %350 = vsyncpa [#allocation6 + $0x1], 1 }

</bundles_post_ra>
